<compile_context>
chip_gen: v7x
topology: tpu7x:2x2x1
jax: 0.10.0
libtpu: 0.0.40
codegen_flags: <defaults>
</compile_context>

<pallas_src>
import jax
import jax.numpy as jnp
from jax.experimental import pallas as pl
from jax.experimental.pallas import tpu as pltpu


def task_embedding_kernel(x_ref, w1_ref, b1_ref, w2_ref, b2_ref,
                          gamma_ref, beta_ref, o_ref):
    x = x_ref[...]        # (TB, 4)  -- input affine already folded into w1/b1
    w1 = w1_ref[...]      # (4, 32)

    # fc1 as 4 VPU broadcast FMAs (K=4 is far too small to be worth the MXU).
    h = b1_ref[...] + x[:, 0:1] * w1[0:1, :]
    h = h + x[:, 1:2] * w1[1:2, :]
    h = h + x[:, 2:3] * w1[2:3, :]
    h = h + x[:, 3:4] * w1[3:4, :]
    h = jnp.maximum(h, 0.0)                                   # (TB, 32)

    # fc2 + ReLU on the MXU: (TB, 32) @ (32, 128) -> (TB, 128), f32 accumulation.
    y = jnp.dot(h, w2_ref[...], preferred_element_type=jnp.float32) + b2_ref[...]
    y = jnp.maximum(y, 0.0)

    # LayerNorm over the 128-feature axis (== LayerNorm([128,1,1]) on the
    # (B,128,1,1) view), eps = 1e-5 (PyTorch default), biased variance, affine.
    mean = jnp.mean(y, axis=-1, keepdims=True)
    centered = y - mean
    var = jnp.mean(centered * centered, axis=-1, keepdims=True)
    y_norm = centered * jax.lax.rsqrt(var + 1e-5)

    o_ref[...] = (y_norm * gamma_ref[...] + beta_ref[...]).astype(o_ref.dtype)


# Tile sizing: per buffer the out tile is tb*512 B and the (tb,4) x tile is
# lane-padded to 128 lanes (also tb*512 B).  Double-buffered total = tb * 2 KiB.
_MAX_TILE_B = 8192                    # 16 MiB double-buffered
_VMEM_LIMIT_BYTES = 32 * 1024 * 1024  # explicit (v5e scoped default is only 16 MiB)


def _round_up(x, m):
    return ((x + m - 1) // m) * m


def _choose_tile_b(batch, max_tile=_MAX_TILE_B):
    """Pick a batch tile (multiple of 8 unless it equals the full batch)."""
    if batch > max_tile:
        return max_tile                      # grid >= 2 automatically
    if batch >= 2048:
        # Split mid-size batches into ~4 tiles so the "parallel" grid axis gives
        # v7x's two TensorCores something to shard; v5e/v6e just pipeline them.
        return min(max_tile, max(8, _round_up(pl.cdiv(batch, 4), 8)))
    return batch                             # single full-extent block


def _pallas_forward(x, w1, b1, w2, b2, gamma, beta, tile_b, out_dtype):
    B = x.shape[0]
    grid = (pl.cdiv(B, tile_b),)             # partial last block handled by Pallas
    return pl.pallas_call(
        task_embedding_kernel,
        out_shape=jax.ShapeDtypeStruct((B, 128), out_dtype),
        grid=grid,
        in_specs=[
            pl.BlockSpec((tile_b, 4), lambda i: (i, 0)),   # x     (tiled over batch)
            pl.BlockSpec((4, 32), lambda i: (0, 0)),       # w1    (resident)
            pl.BlockSpec((1, 32), lambda i: (0, 0)),       # b1    (resident)
            pl.BlockSpec((32, 128), lambda i: (0, 0)),     # w2    (resident)
            pl.BlockSpec((1, 128), lambda i: (0, 0)),      # b2    (resident)
            pl.BlockSpec((1, 128), lambda i: (0, 0)),      # gamma (resident)
            pl.BlockSpec((1, 128), lambda i: (0, 0)),      # beta  (resident)
        ],
        out_specs=pl.BlockSpec((tile_b, 128), lambda i: (i, 0)),
        compiler_params=pltpu.CompilerParams(
            dimension_semantics=("parallel",),             # megacore sharding on v7x
            vmem_limit_bytes=_VMEM_LIMIT_BYTES,
        ),
    )(x, w1, b1, w2, b2, gamma, beta)


def task_embedding_forward(values, params, *, tile_b=None,
                           min_pallas_batch=256, out_dtype=jnp.float32):
    """values: (B, 4) float32 -> (B, 128, 1, 1) of out_dtype.

    tile_b, if given explicitly, must be a multiple of 8 (or >= B).
    """
    B = values.shape[0]

    # Fold the input affine (x - 8) / 4.6 into fc1 (exact algebra):
    #   ((x - 8)/4.6) @ W + b  ==  x @ (W/4.6) + (b - (8/4.6) * sum_k W[k, :])
    w1 = params["w1"] * (1.0 / 4.6)                                    # (4, 32)
    b1 = params["b1"] - (8.0 / 4.6) * jnp.sum(params["w1"], axis=0,
                                              keepdims=True)           # (1, 32)
    w2, b2 = params["w2"], params["b2"]
    gamma, beta = params["gamma"], params["beta"]

    if B < min_pallas_batch:
        # Tiny-batch fast path (the module's real usage is B~2): pallas_call launch
        # and DMA setup dominate there; let XLA fuse the whole thing instead.
        h = jnp.maximum(values @ w1 + b1, 0.0)
        y = jnp.maximum(h @ w2 + b2, 0.0)
        mean = jnp.mean(y, axis=-1, keepdims=True)
        var = jnp.mean((y - mean) ** 2, axis=-1, keepdims=True)
        out = ((y - mean) * jax.lax.rsqrt(var + 1e-5) * gamma + beta).astype(out_dtype)
    else:
        tb = _choose_tile_b(B) if tile_b is None else min(tile_b, B)
        out = _pallas_forward(values, w1, b1, w2, b2, gamma, beta, tb, out_dtype)

    # PyTorch: values.view(-1, 128, 1, 1)
    return out.reshape(B, 128, 1, 1)


def make_params(key):
    """Deterministic synthetic parameters (shapes from TaskEmbedding.__init__)."""
    k1, k2, k3, k4, k5, k6 = jax.random.split(key, 6)
    # Linear weights stored pre-transposed: (in_features, out_features)
    w1 = jax.random.uniform(k1, (4, 32), jnp.float32, -0.5, 0.5)      # fc1.weight.T
    b1 = jax.random.uniform(k2, (1, 32), jnp.float32, -0.5, 0.5)      # fc1.bias
    w2 = jax.random.uniform(k3, (32, 128), jnp.float32, -0.18, 0.18)  # fc2.weight.T
    b2 = jax.random.uniform(k4, (1, 128), jnp.float32, -0.18, 0.18)   # fc2.bias
    # LayerNorm affine params (flattened from (128,1,1) to (1,128))
    gamma = 1.0 + 0.1 * jax.random.normal(k5, (1, 128), jnp.float32)
    beta = 0.1 * jax.random.normal(k6, (1, 128), jnp.float32)
    return {"w1": w1, "b1": b1, "w2": w2, "b2": b2, "gamma": gamma, "beta": beta}


def reference_forward(values, params):
    """Pure-JAX reference of the PyTorch forward, for sanity checking."""
    x = (values - 8.0) / 4.6
    h = jnp.maximum(x @ params["w1"] + params["b1"], 0.0)
    y = jnp.maximum(h @ params["w2"] + params["b2"], 0.0)
    mean = jnp.mean(y, axis=-1, keepdims=True)
    var = jnp.mean((y - mean) ** 2, axis=-1, keepdims=True)
    yn = (y - mean) / jnp.sqrt(var + 1e-5)
    out = yn * params["gamma"] + params["beta"]
    return out.reshape(-1, 128, 1, 1)


if __name__ == "__main__":
    key = jax.random.PRNGKey(0)
    kp, kx1, kx2 = jax.random.split(key, 3)
    params = make_params(kp)

    # --- Tiny-batch fast path (plain jnp, like the module's real B=2 usage) ---
    B = 2
    values = jax.random.uniform(kx1, (B, 4), jnp.float32, 0.0, 16.0)
    ref = reference_forward(values, params)
    out_fast = jax.block_until_ready(task_embedding_forward(values, params))
    assert out_fast.shape == (B, 128, 1, 1), out_fast.shape
    assert jnp.allclose(out_fast, ref, atol=1e-4, rtol=1e-4), "mismatch (jnp fast path)"

    # --- Pallas single-block path (force past the tiny-batch cutoff) ---
    out_p = jax.block_until_ready(
        task_embedding_forward(values, params, min_pallas_batch=0))
    assert out_p.shape == (B, 128, 1, 1), out_p.shape
    assert jnp.allclose(out_p, ref, atol=1e-4, rtol=1e-4), "mismatch (pallas, B=2)"

    # --- Pallas tiled path with a non-divisible grid (partial last block) ---
    B2 = 20
    values2 = jax.random.uniform(kx2, (B2, 4), jnp.float32, 0.0, 16.0)
    out2 = jax.block_until_ready(
        task_embedding_forward(values2, params, tile_b=8, min_pallas_batch=0))
    ref2 = reference_forward(values2, params)
    assert out2.shape == (B2, 128, 1, 1), out2.shape
    assert jnp.allclose(out2, ref2, atol=1e-4, rtol=1e-4), "mismatch (pallas, tiled)"

    print("KERNEL_OK")
</pallas_src>

<mosaic_0001>
module attributes {stable_mosaic.version = 11 : i64} {
  func.func @task_embedding_kernel(%arg0: i32, %arg1: memref<2x4xf32, #tpu.memory_space<vmem>>, %arg2: memref<4x32xf32, #tpu.memory_space<vmem>>, %arg3: memref<1x32xf32, #tpu.memory_space<vmem>>, %arg4: memref<32x128xf32, #tpu.memory_space<vmem>>, %arg5: memref<1x128xf32, #tpu.memory_space<vmem>>, %arg6: memref<1x128xf32, #tpu.memory_space<vmem>>, %arg7: memref<1x128xf32, #tpu.memory_space<vmem>>, %arg8: memref<2x128xf32, #tpu.memory_space<vmem>>) attributes {dimension_semantics = [#tpu.dimension_semantics<parallel>], iteration_bounds = array<i64: 1>, scalar_prefetch = 0 : i64, scratch_operands = 0 : i64, tpu.core_type = #tpu.core_type<tc>, window_params = [{transform_indices = @transform_0, window_bounds = array<i64: 2, 4>}, {pipeline_mode = #tpu.pipeline_mode<synchronous>, transform_indices = @transform_1, window_bounds = array<i64: 4, 32>}, {pipeline_mode = #tpu.pipeline_mode<synchronous>, transform_indices = @transform_2, window_bounds = array<i64: 1, 32>}, {pipeline_mode = #tpu.pipeline_mode<synchronous>, transform_indices = @transform_3, window_bounds = array<i64: 32, 128>}, {pipeline_mode = #tpu.pipeline_mode<synchronous>, transform_indices = @transform_4, window_bounds = array<i64: 1, 128>}, {pipeline_mode = #tpu.pipeline_mode<synchronous>, transform_indices = @transform_5, window_bounds = array<i64: 1, 128>}, {pipeline_mode = #tpu.pipeline_mode<synchronous>, transform_indices = @transform_6, window_bounds = array<i64: 1, 128>}, {transform_indices = @transform_7, window_bounds = array<i64: 2, 128>}]} {
    %c0 = arith.constant 0 : index
    %c0_0 = arith.constant 0 : index
    %0 = vector.load %arg1[%c0, %c0_0] : memref<2x4xf32, #tpu.memory_space<vmem>>, vector<2x4xf32>
    %c0_1 = arith.constant 0 : index
    %c0_2 = arith.constant 0 : index
    %1 = vector.load %arg2[%c0_1, %c0_2] : memref<4x32xf32, #tpu.memory_space<vmem>>, vector<4x32xf32>
    %c0_3 = arith.constant 0 : index
    %c0_4 = arith.constant 0 : index
    %2 = vector.load %arg3[%c0_3, %c0_4] : memref<1x32xf32, #tpu.memory_space<vmem>>, vector<1x32xf32>
    %3 = vector.extract_strided_slice %0 {offsets = [0, 0], sizes = [2, 1], strides = [1, 1]} : vector<2x4xf32> to vector<2x1xf32>
    %4 = vector.extract_strided_slice %1 {offsets = [0, 0], sizes = [1, 32], strides = [1, 1]} : vector<4x32xf32> to vector<1x32xf32>
    %5 = vector.broadcast %3 : vector<2x1xf32> to vector<2x32xf32>
    %6 = vector.broadcast %4 : vector<1x32xf32> to vector<2x32xf32>
    %7 = arith.mulf %5, %6 : vector<2x32xf32>
    %8 = vector.broadcast %2 : vector<1x32xf32> to vector<2x32xf32>
    %9 = arith.addf %8, %7 : vector<2x32xf32>
    %10 = vector.extract_strided_slice %0 {offsets = [0, 1], sizes = [2, 1], strides = [1, 1]} : vector<2x4xf32> to vector<2x1xf32>
    %11 = vector.extract_strided_slice %1 {offsets = [1, 0], sizes = [1, 32], strides = [1, 1]} : vector<4x32xf32> to vector<1x32xf32>
    %12 = vector.broadcast %10 : vector<2x1xf32> to vector<2x32xf32>
    %13 = vector.broadcast %11 : vector<1x32xf32> to vector<2x32xf32>
    %14 = arith.mulf %12, %13 : vector<2x32xf32>
    %15 = arith.addf %9, %14 : vector<2x32xf32>
    %16 = vector.extract_strided_slice %0 {offsets = [0, 2], sizes = [2, 1], strides = [1, 1]} : vector<2x4xf32> to vector<2x1xf32>
    %17 = vector.extract_strided_slice %1 {offsets = [2, 0], sizes = [1, 32], strides = [1, 1]} : vector<4x32xf32> to vector<1x32xf32>
    %18 = vector.broadcast %16 : vector<2x1xf32> to vector<2x32xf32>
    %19 = vector.broadcast %17 : vector<1x32xf32> to vector<2x32xf32>
    %20 = arith.mulf %18, %19 : vector<2x32xf32>
    %21 = arith.addf %15, %20 : vector<2x32xf32>
    %22 = vector.extract_strided_slice %0 {offsets = [0, 3], sizes = [2, 1], strides = [1, 1]} : vector<2x4xf32> to vector<2x1xf32>
    %23 = vector.extract_strided_slice %1 {offsets = [3, 0], sizes = [1, 32], strides = [1, 1]} : vector<4x32xf32> to vector<1x32xf32>
    %24 = vector.broadcast %22 : vector<2x1xf32> to vector<2x32xf32>
    %25 = vector.broadcast %23 : vector<1x32xf32> to vector<2x32xf32>
    %26 = arith.mulf %24, %25 : vector<2x32xf32>
    %27 = arith.addf %21, %26 : vector<2x32xf32>
    %cst = arith.constant 0.000000e+00 : f32
    %28 = vector.broadcast %cst : f32 to vector<2x32xf32>
    %29 = arith.maximumf %27, %28 : vector<2x32xf32>
    %c0_5 = arith.constant 0 : index
    %c0_6 = arith.constant 0 : index
    %30 = vector.load %arg4[%c0_5, %c0_6] : memref<32x128xf32, #tpu.memory_space<vmem>>, vector<32x128xf32>
    %cst_7 = arith.constant dense<0.000000e+00> : vector<2x128xf32>
    %31 = tpu.matmul %29, %30, %cst_7 {dimension_numbers = #tpu.dot_dimension_numbers<[1], [0], [0], [1], [0, 0, 1, 1], [], []>} : vector<2x32xf32>, vector<32x128xf32>, vector<2x128xf32> -> vector<2x128xf32>
    %c0_8 = arith.constant 0 : index
    %c0_9 = arith.constant 0 : index
    %32 = vector.load %arg5[%c0_8, %c0_9] : memref<1x128xf32, #tpu.memory_space<vmem>>, vector<1x128xf32>
    %33 = vector.broadcast %32 : vector<1x128xf32> to vector<2x128xf32>
    %34 = arith.addf %31, %33 : vector<2x128xf32>
    %cst_10 = arith.constant 0.000000e+00 : f32
    %35 = vector.broadcast %cst_10 : f32 to vector<2x128xf32>
    %36 = arith.maximumf %34, %35 : vector<2x128xf32>
    %cst_11 = arith.constant dense<0.000000e+00> : vector<2xf32>
    %37 = vector.multi_reduction <add>, %36, %cst_11 [1] : vector<2x128xf32> to vector<2xf32>
    %38 = vector.shape_cast %37 : vector<2xf32> to vector<2x1xf32>
    %cst_12 = arith.constant 1.280000e+02 : f32
    %39 = vector.broadcast %cst_12 : f32 to vector<2x1xf32>
    %40 = arith.divf %38, %39 : vector<2x1xf32>
    %41 = vector.broadcast %40 : vector<2x1xf32> to vector<2x128xf32>
    %42 = arith.subf %36, %41 : vector<2x128xf32>
    %43 = arith.mulf %42, %42 : vector<2x128xf32>
    %cst_13 = arith.constant dense<0.000000e+00> : vector<2xf32>
    %44 = vector.multi_reduction <add>, %43, %cst_13 [1] : vector<2x128xf32> to vector<2xf32>
    %45 = vector.shape_cast %44 : vector<2xf32> to vector<2x1xf32>
    %cst_14 = arith.constant 1.280000e+02 : f32
    %46 = vector.broadcast %cst_14 : f32 to vector<2x1xf32>
    %47 = arith.divf %45, %46 : vector<2x1xf32>
    %cst_15 = arith.constant 9.99999974E-6 : f32
    %48 = vector.broadcast %cst_15 : f32 to vector<2x1xf32>
    %49 = arith.addf %47, %48 : vector<2x1xf32>
    %50 = math.rsqrt %49 : vector<2x1xf32>
    %51 = vector.broadcast %50 : vector<2x1xf32> to vector<2x128xf32>
    %52 = arith.mulf %42, %51 : vector<2x128xf32>
    %c0_16 = arith.constant 0 : index
    %c0_17 = arith.constant 0 : index
    %53 = vector.load %arg6[%c0_16, %c0_17] : memref<1x128xf32, #tpu.memory_space<vmem>>, vector<1x128xf32>
    %54 = vector.broadcast %53 : vector<1x128xf32> to vector<2x128xf32>
    %55 = arith.mulf %52, %54 : vector<2x128xf32>
    %c0_18 = arith.constant 0 : index
    %c0_19 = arith.constant 0 : index
    %56 = vector.load %arg7[%c0_18, %c0_19] : memref<1x128xf32, #tpu.memory_space<vmem>>, vector<1x128xf32>
    %57 = vector.broadcast %56 : vector<1x128xf32> to vector<2x128xf32>
    %58 = arith.addf %55, %57 : vector<2x128xf32>
    %c0_20 = arith.constant 0 : index
    %c0_21 = arith.constant 0 : index
    %59 = vector.load %arg8[%c0_20, %c0_21] : memref<2x128xf32, #tpu.memory_space<vmem>>, vector<2x128xf32>
    tpu.vector_store %arg8[%c0_20, %c0_21], %58 {strides = array<i32>} : memref<2x128xf32, #tpu.memory_space<vmem>>, vector<2x128xf32>,
    return
  }
  func.func @transform_0(%arg0: i32) -> (i32, i32) {
    %c0_i32 = arith.constant 0 : i32
    %c0_i32_0 = arith.constant 0 : i32
    return %arg0, %c0_i32 : i32, i32
  }
  func.func @transform_1(%arg0: i32) -> (i32, i32) {
    %c0_i32 = arith.constant 0 : i32
    %c0_i32_0 = arith.constant 0 : i32
    %c0_i32_1 = arith.constant 0 : i32
    return %c0_i32, %c0_i32_0 : i32, i32
  }
  func.func @transform_2(%arg0: i32) -> (i32, i32) {
    %c0_i32 = arith.constant 0 : i32
    %c0_i32_0 = arith.constant 0 : i32
    %c0_i32_1 = arith.constant 0 : i32
    return %c0_i32, %c0_i32_0 : i32, i32
  }
  func.func @transform_3(%arg0: i32) -> (i32, i32) {
    %c0_i32 = arith.constant 0 : i32
    %c0_i32_0 = arith.constant 0 : i32
    %c0_i32_1 = arith.constant 0 : i32
    return %c0_i32, %c0_i32_0 : i32, i32
  }
  func.func @transform_4(%arg0: i32) -> (i32, i32) {
    %c0_i32 = arith.constant 0 : i32
    %c0_i32_0 = arith.constant 0 : i32
    %c0_i32_1 = arith.constant 0 : i32
    return %c0_i32, %c0_i32_0 : i32, i32
  }
  func.func @transform_5(%arg0: i32) -> (i32, i32) {
    %c0_i32 = arith.constant 0 : i32
    %c0_i32_0 = arith.constant 0 : i32
    %c0_i32_1 = arith.constant 0 : i32
    return %c0_i32, %c0_i32_0 : i32, i32
  }
  func.func @transform_6(%arg0: i32) -> (i32, i32) {
    %c0_i32 = arith.constant 0 : i32
    %c0_i32_0 = arith.constant 0 : i32
    %c0_i32_1 = arith.constant 0 : i32
    return %c0_i32, %c0_i32_0 : i32, i32
  }
  func.func @transform_7(%arg0: i32) -> (i32, i32) {
    %c0_i32 = arith.constant 0 : i32
    %c0_i32_0 = arith.constant 0 : i32
    return %arg0, %c0_i32 : i32, i32
  }
}

</mosaic_0001>

<bundles_post_ra>
// kernel: tpu_custom_call.1
= control target key start
LH: loop header
LB: loop body
LE: loop exit
PB: predicated region body
PF: predicated region fallthrough
CT: control target
= control target key end

     0   :  { %12 = vsyncpa [#allocation3], 0  ;;  %s503_s0 = inlined_call_operand.hbm [shape: f32[2,4], index: 0, kind: input, shape index: {}]   ;;  %s504_s1 = inlined_call_operand.hbm [shape: f32[4,32], index: 1, kind: input, shape index: {}]   ;;  %s505_s2 = inlined_call_operand.vmem [shape: f32[1,32], index: 2, kind: input, shape index: {}]   ;;  %s506_s3 = inlined_call_operand.hbm [shape: f32[32,128], index: 3, kind: input, shape index: {}]   ;;  %s507_s4 = inlined_call_operand.vmem [shape: f32[1,128], index: 4, kind: input, shape index: {}]   ;;  %s508_s5 = inlined_call_operand.vmem [shape: f32[1,128], index: 5, kind: input, shape index: {}]   ;;  %s509_s6 = inlined_call_operand.vmem [shape: f32[1,128], index: 6, kind: input, shape index: {}]   ;;  %s510_s7 = inlined_call_operand.hbm [shape: f32[2,128], index: 7, kind: output, shape index: {}]  }
   0x1   :  { %13 = vsyncpa [#allocation6], 0 }
   0x2   :  { %14 = vsyncpa [#allocation4], 0  ;;  %s390_s24 = smov [#allocation5]   ;;  %s391_s26 = smov [#allocation2]  }
   0x3   :  { %s31_s25 = sshll.u32 %s390_s24, 4  ;;  %s21_s27 = sshll.u32 %s391_s26, 4  ;;  %s32_s25 = int_to_ptr.vmem [resolvable:$true] %s31_s25  ;;  %s22_s27 = int_to_ptr.vmem [resolvable:$true] %s21_s27 }
   0x4   :  { %s296_s30 = scalar_lea.hbm %s504_s1, 64 }
   0x5   :  { %p297_p0 = scmp.ne.s32.totalorder %s504_s1, %s296_s30  ;;  %p300_p1 = scmp.lt.u32.totalorder %s296_s30, %s504_s1 }
   0x7   :  { %p302_p2 = pnand %p300_p1, %p297_p0 }
   0x9   :  { %305 = shalt.err (!%p302_p2)
}
   0xa   :  { %s306_s12 = scalar_lea.vmem %s32_s25, 64  ;;  %p311_p4 = scmp.lt.s32.totalorder %s32_s25, %s32_s25 }
   0xb   :  { %p307_p3 = scmp.ne.s32.totalorder %s32_s25, %s306_s12  ;;  %p312_p5 = scmp.lt.s32.totalorder %s306_s12, %s306_s12 }
   0xd   :  { %p313_p6 = por %p312_p5, %p311_p4 }
   0xf   :  { %p314_p7 = pnand %p313_p6, %p307_p3 }
  0x11   :  { %317 = shalt.err (!%p314_p7)
}
  0x12   :  { %34 = dma.hbm_to_vmem [thread:$0]  %s504_s1, 64, %s32_s25, [#allocation6]  }
  0x13   :  { %s318_s17 = scalar_lea.hbm %s503_s0, 32 }
  0x14   :  { %p319_p8 = scmp.ne.s32.totalorder %s503_s0, %s318_s17  ;;  %p322_p9 = scmp.lt.u32.totalorder %s318_s17, %s503_s0 }
  0x16   :  { %p324_p10 = pnand %p322_p9, %p319_p8 }
  0x18   :  { %327 = shalt.err (!%p324_p10)
}
  0x19   :  { %s328_s22 = scalar_lea.vmem %s22_s27, 32  ;;  %p333_p12 = scmp.lt.s32.totalorder %s22_s27, %s22_s27 }
  0x1a   :  { %p329_p11 = scmp.ne.s32.totalorder %s22_s27, %s328_s22  ;;  %p334_p13 = scmp.lt.s32.totalorder %s328_s22, %s328_s22 }
  0x1c   :  { %p335_p0 = por %p334_p13, %p333_p12 }
  0x1e   :  { %p336_p1 = pnand %p335_p0, %p329_p11 }
  0x20   :  { %339 = shalt.err (!%p336_p1)
}
  0x21   :  { %24 = dma.hbm_to_vmem [thread:$0]  %s503_s0, 32, %s22_s27, [#allocation3]  }
  0x22   :  { %s392_s24 = smov [#allocation7]   ;;  %s340_s29 = scalar_lea.hbm %s506_s3, 512 }
  0x23   :  { %s42_s25 = sshll.u32 %s392_s24, 4  ;;  %p341_p2 = scmp.ne.s32.totalorder %s506_s3, %s340_s29  ;;  %s43_s25 = int_to_ptr.vmem [resolvable:$true] %s42_s25 }
  0x24   :  { %p344_p3 = scmp.lt.u32.totalorder %s340_s29, %s506_s3 }
  0x26   :  { %p346_p4 = pnand %p344_p3, %p341_p2 }
  0x28   :  { %349 = shalt.err (!%p346_p4)
}
  0x29   :  { %s350_s11 = scalar_lea.vmem %s43_s25, 512  ;;  %p355_p6 = scmp.lt.s32.totalorder %s43_s25, %s43_s25 }
  0x2a   :  { %p351_p5 = scmp.ne.s32.totalorder %s43_s25, %s350_s11  ;;  %p356_p7 = scmp.lt.s32.totalorder %s350_s11, %s350_s11 }
  0x2c   :  { %p357_p8 = por %p356_p7, %p355_p6 }
  0x2e   :  { %p358_p9 = pnand %p357_p8, %p351_p5 }
  0x30   :  { %361 = shalt.err (!%p358_p9)
}
  0x31   :  { %s393_s0 = smov 128   ;;  %s394_s27 = smov 8  }
  0x32   :  { %48 = dma.hbm_to_vmem [thread:$0]  %s506_s3, 512, %s43_s25, [#allocation6], %s393_s0, %s393_s0, %s394_s27  }
  0x33   :  { %384 = dma.done.wait [#allocation3], 32  }
  0x34   :  { %385 = vsyncadd [#allocation3], 4294967264 }
  0x35   :  { %386 = dma.done.wait [#allocation6], 576  }
  0x36   :  { %387 = vsyncadd [#allocation6], 4294966720  ;;  %v395_v0 = vmov 0   ;;  %v396_v1 = vmov 2   ;;  %v64_v2 = vld [vmem:[#allocation2] sm:$0x3]  ;;  %v72_v13 = vlaneseq }
  0x37   :  { %289 = vset.pattern.permute.xlu0 %v395_v0  ;;  %291 = vset.pattern.permute.xlu1 %v396_v1  ;;  %v397_v3 = vmov 1   ;;  %v398_v4 = vmov 3   ;;  %v115_v5 = vld [vmem:[#allocation7] sm:$0xff]  ;;  %v116_v6 = vld [vmem:[#allocation7 + $0x8] sm:$0xff]  ;;  %v399_v8 = vmov 0.0|0.0   ;;  %v117_v9 = vld [vmem:[#allocation7 + $0x10] sm:$0xff] }
  0x38   :  { %69 = vperm.xlu0 %289, %v64_v2   ;;  %95 = vperm.xlu1 %291, %v64_v2   ;;  %v271_v7 = vpack.c.bf16 %v116_v6, %v115_v5  ;;  %v118_v10 = vld [vmem:[#allocation7 + $0x18] sm:$0xff]  ;;  %vm400_vm0 = vmmov 0   ;;  %v401_v12 = vmov 0.0   ;;  %v73_v14 = vshrl.u32 %v72_v13, 7  ;;  %s402_s19 = smov [#allocation8]  }
  0x39   :  { %270 = vmatprep.subr.bf16.mxu0 %v399_v8  ;;  %v274_v11 = vpack.c.bf16 %v118_v10, %v117_v9  ;;  %267 = vmatprep.mubr.msk.f32.mxu0 %vm400_vm0, %v401_v12  ;;  %v65_v16 = vld [vmem:[#allocation5] sm:$0xf]  ;;  %v249_v25 = vld [vmem:[%s505_s2] ss:$0 sm:$0xff]  ;;  %vm126_vm1 = vcmask 261120   ;;  %vm201_vm2 = vcmask 1041408  }
  0x3a   :  { %272 = vmatpush3.bf16.msra.mxu0 %v271_v7  ;;  %v74_v15 = vsub.s32 0, %v73_v14  ;;  %v90_v18 = vsub.s32 1, %v73_v14  ;;  %v100_v20 = vsub.s32 2, %v73_v14  ;;  %v110_v22 = vsub.s32 3, %v73_v14  ;;  %v250_v38 = vld [vmem:[%s507_s4] ss:$0 sm:$0xff] }
  0x3b   :  { %273 = vmatprep.subr.bf16.mxu0 %v399_v8  ;;  %v252_v53 = vld [vmem:[%s508_s5] ss:$0 sm:$0xff]  ;;  %s239_s20 = sshll.u32 %s402_s19, 4  ;;  %s240_s20 = int_to_ptr.vmem [resolvable:$true] %s239_s20 }
  0x3c   :  { %290 = vset.pattern.permute.xlu0 %v397_v3  ;;  %292 = vset.pattern.permute.xlu1 %v398_v4  ;;  %v75_v17 = vrot.slane %v65_v16, %v74_v15  ;;  %v91_v24 = vrot.slane %v65_v16, %v90_v18  ;;  %v101_v26 = vrot.slane %v65_v16, %v100_v20  ;;  %v253_v55 = vld [vmem:[%s509_s6] ss:$0 sm:$0xff]  ;;  %s362_s21 = scalar_lea.vmem %s240_s20, 32  ;;  %p367_p11 = scmp.lt.s32.totalorder %s240_s20, %s240_s20 }
  0x3d   :  { %85 = vperm.xlu0 %290, %v64_v2   ;;  %105 = vperm.xlu1 %292, %v64_v2   ;;  %v111_v27 = vrot.slane %v65_v16, %v110_v22  ;;  %p363_p10 = scmp.ne.s32.totalorder %s240_s20, %s362_s21  ;;  %p368_p12 = scmp.lt.s32.totalorder %s362_s21, %s362_s21 }
  0x3e   :  { %275 = vmatpush3.bf16.msra.mxu0 %v274_v11 }
  0x3f   :  { %p369_p13 = por %p368_p12, %p367_p11 }
  0x41   :  { %293 = vset.pattern.permute.xlu0 %v398_v4  ;;  %p370_p0 = pnand %p369_p13, %p363_p10 }
  0xb7   :  { %v70_v19 = vpop.permute.xlu0 %69  ;;  %v96_v21 = vpop.permute.xlu1 %95 }
  0xb8   :  { %v76_v23 = vmul.f32 %v75_v17, %v70_v19  ;;  %v102_v32 = vmul.f32 %v101_v26, %v96_v21 }
  0xba   :  { %v83_v30 = vadd.f32 %v249_v25, %v76_v23 }
  0xbc   :  { %v86_v28 = vpop.permute.xlu0 %85  ;;  %v106_v29 = vpop.permute.xlu1 %105 }
  0xbd   :  { %v92_v31 = vmul.f32 %v91_v24, %v86_v28  ;;  %v112_v34 = vmul.f32 %v111_v27, %v106_v29 }
  0xbf   :  { %v93_v33 = vadd.f32 %v92_v31, %v83_v30 }
  0xc1   :  { %v103_v35 = vadd.f32 %v102_v32, %v93_v33 }
  0xc3   :  { %v113_v36 = vadd.f32 %v112_v34, %v103_v35 }
  0xc5   :  { %v114_v37 = vmax.f32 %v113_v36, 0.0 }
  0xc7   :  { %268 = vmatmul.mubr.msk.f32.vlgmr.msra.gmra.mrb[0].mxu0 %vm126_vm1, %v114_v37 }
 0x19a   :  { %v196_v39 = vpop.f32.mrb[0].mxu0 }
 0x19b   :  { %v197_v40 = vadd.f32 %v250_v38, %v196_v39  ;;  %v269_v41 = vpop.f32.mrb[1].mxu0 }
 0x19d   :  { %v200_v42 = vmax.f32 %v197_v40, 0.0 }
 0x19f   :  { %v202_v43 = vsel %vm201_vm2, %v200_v42, 0.0 }
 0x1a0   :  { %203 = vadd.xlane.f32.xlu1 %v202_v43 }
 0x22d   :  { %v204_v44 = vpop.xlane.xlu1 %203 }
 0x22e   :  { %v206_v45 = vmul.f32 0.0078125, %v204_v44 }
 0x230   :  { %v207_v46 = vsub.f32 %v200_v42, %v206_v45 }
 0x232   :  { %v208_v47 = vmul.f32 %v207_v46, %v207_v46 }
 0x234   :  { %v209_v48 = vsel %vm201_vm2, %v208_v47, 0.0 }
 0x235   :  { %210 = vadd.xlane.f32.xlu0 %v209_v48 }
 0x2c2   :  { %v211_v49 = vpop.xlane.xlu0 %210 }
 0x2c3   :  { %v212_v50 = vmul.f32 0.0078125, %v211_v49 }
 0x2c5   :  { %v213_v51 = vadd.f32 1e-05, %v212_v50 }
 0x2c7   :  { %294 = vrsqrt.f32 %v213_v51 }
 0x2d1   :  { %v295_v52 = vpop.eup %294 }
 0x2d2   :  { %v215_v54 = vmul.f32 %v295_v52, %v207_v46 }
 0x2d4   :  { %v223_v56 = vmul.f32 %v252_v53, %v215_v54 }
 0x2d6   :  { %v231_v57 = vadd.f32 %v253_v55, %v223_v56 }
 0x2d8   :  { %232 = vst [vmem:[#allocation8] sm:$0x3] %v231_v57 }
 0x2d9   :  { %373 = shalt.err (!%p370_p0)
}
 0x2da   :  { %s374_s1 = scalar_lea.hbm %s510_s7, 32 }
 0x2db   :  { %p375_p1 = scmp.ne.s32.totalorder %s510_s7, %s374_s1  ;;  %p378_p2 = scmp.lt.u32.totalorder %s374_s1, %s510_s7 }
 0x2dd   :  { %p380_p3 = pnand %p378_p2, %p375_p1 }
 0x2df   :  { %383 = shalt.err (!%p380_p3)
}
 0x2e0   :  { %242 = dma.vmem_to_hbm [thread:$0]  %s240_s20, 32, %s510_s7, [#allocation4]  }
 0x2e1   :  { %388 = dma.done.wait [#allocation4], 32  }
 0x2e2   :  { %389 = vsyncadd [#allocation4], 4294967264 }
 0x2e3   :  { %246 = vsyncpa [#allocation3], 1 }
 0x2e4   :  { %247 = vsyncpa [#allocation6], 1 }
 0x2e5   :  { %248 = vsyncpa [#allocation4], 1 }

</bundles_post_ra>
